<compile_context>
chip_gen: v7x
topology: tpu7x:2x2x1
jax: 0.10.0
libtpu: 0.0.40
codegen_flags: <defaults>
</compile_context>

<pallas_src>
import math

import jax
import jax.numpy as jnp
from jax.experimental import pallas as pl
from jax.experimental.pallas import tpu as pltpu


def _gelu_tanh(x):
    # Matches torch.nn.functional.gelu(x, approximate='tanh').
    c = 0.7978845608028654  # sqrt(2/pi)
    return 0.5 * x * (1.0 + jnp.tanh(c * (x + 0.044715 * x * x * x)))


def gemma_mlp_kernel(x_ref, wg_ref, wu_ref, wd_ref, o_ref, acc_ref):
    j = pl.program_id(1)

    @pl.when(j == 0)
    def _():
        acc_ref[...] = jnp.zeros_like(acc_ref)

    x = x_ref[...]                                                       # [tm, H]
    # Two MXU passes sharing the VMEM-resident x: same MXU cycles as one wide
    # fused dot, but no wrapper-side weight interleave and no [tm, 2*ti]
    # temporary + slices.
    gate = jnp.dot(x, wg_ref[...], preferred_element_type=jnp.float32)   # [tm, ti] f32
    up = jnp.dot(x, wu_ref[...], preferred_element_type=jnp.float32)     # [tm, ti] f32
    h = _gelu_tanh(gate) * up                                            # f32 (EUP/VPU)
    # Down-projection partial sum, accumulated in f32.
    acc_ref[...] += jnp.dot(h.astype(x_ref.dtype), wd_ref[...],
                            preferred_element_type=jnp.float32)          # [tm, H]

    @pl.when(j == pl.num_programs(1) - 1)
    def _():
        o_ref[...] = acc_ref[...].astype(o_ref.dtype)


def _round_up(a, b):
    return (a + b - 1) // b * b


def _vmem_capacity_bytes():
    """Physical VMEM of the current generation; conservative fallback 64 MiB."""
    try:
        info = pltpu.get_tpu_info()
        cap = getattr(info, "vmem_capacity_bytes", None)
        if cap:
            return int(cap)
    except Exception:
        pass
    return 64 << 20  # v7x per-TensorCore size — safe lower bound everywhere


def _vmem_estimate(tm, ti, H, act_bytes, w_bytes, w_bufs):
    """Pipelined buffers + accumulator + compiler-managed intermediates."""
    return (2 * tm * H * act_bytes              # x tiles (double-buffered)
            + 2 * w_bufs * H * ti * w_bytes     # gate + up weight tiles
            + w_bufs * ti * H * w_bytes         # down weight tiles
            + 2 * tm * H * act_bytes            # output tiles
            + tm * H * 4                        # f32 accumulator scratch
            + 2 * tm * ti * 4                   # gate/up f32 matmul results
            + tm * ti * (4 + act_bytes))        # h (f32) + its act-dtype cast


def gemma_mlp(x, wg_t, wu_t, wd_t, *, tm=None, ti=None, weight_buffers=2):
    """GemmaMLP forward.

    x:     [B, S, H]   activations (f32 or bf16; bf16 recommended in production)
    wg_t:  [H, I]      gate_proj.weight transposed
    wu_t:  [H, I]      up_proj.weight transposed
    wd_t:  [I, H]      down_proj.weight transposed
    weight_buffers:    pipeline depth for the weight tiles (2 = default double
                       buffering; 3 only on 128 MiB-VMEM parts with headroom).
    Returns [B, S, H].
    """
    B, S, H = x.shape
    I = wg_t.shape[1]
    T = B * S

    act_bytes = jnp.dtype(x.dtype).itemsize
    w_bytes = jnp.dtype(wg_t.dtype).itemsize

    vmem_cap = _vmem_capacity_bytes()
    tile_budget = int(vmem_cap * 0.75)          # room for compiler temporaries/spills

    # ---- token tile sizing -------------------------------------------------
    # Sublane pack of the activation dtype: 8 rows (f32), 16 (bf16), 32 (int8/fp8).
    pack = max(8, 32 // act_bytes)
    if tm is None:
        # Prefill/training: big token tile to clear the HBM roofline crossover.
        # Decode / tiny T: shrink to the sublane pack multiple.
        tm_candidates = [512, 256, 128] if T >= 512 else [_round_up(T, pack)]
    else:
        tm_candidates = [tm]

    # ---- intermediate tile sizing -------------------------------------------
    if ti is None:
        ti_candidates = [c for c in (2048, 1024, 512, 256, 128) if I % c == 0] or [I]
    else:
        if I % ti != 0:
            # Keep the weight-tile lane dim MXU-friendly (256/128-aligned divisor).
            ti = next((c for c in (2048, 1024, 512, 256, 128)
                       if c <= ti and I % c == 0), I)
        ti_candidates = [ti]

    # Pick the largest (tm, ti) that fits the per-generation VMEM budget.
    # Priority: big tm (arithmetic intensity), then big ti (fewer reduction
    # steps, larger weight DMAs).
    tm_sel, ti_sel = tm_candidates[-1], ti_candidates[-1]
    found = False
    for tm_c in tm_candidates:
        for ti_c in ti_candidates:
            if _vmem_estimate(tm_c, ti_c, H, act_bytes, w_bytes,
                              weight_buffers) <= tile_budget:
                tm_sel, ti_sel = tm_c, ti_c
                found = True
                break
        if found:
            break
    tm, ti = tm_sel, ti_sel
    n_i = I // ti

    T_pad = _round_up(T, tm)
    x2 = x.reshape(T, H)
    if T_pad != T:
        x2 = jnp.pad(x2, ((0, T_pad - T), (0, 0)))  # zero rows -> zero outputs

    # ---- VMEM limit: estimate + headroom, capped below physical VMEM --------
    vmem_est = _vmem_estimate(tm, ti, H, act_bytes, w_bytes, weight_buffers)
    vmem_limit = int(min(vmem_est + (16 << 20), int(vmem_cap * 0.85)))
    vmem_limit = max(vmem_limit, vmem_est)

    w_mode = pl.Buffered(weight_buffers) if weight_buffers != 2 else None

    def wspec(shape, index_map):
        if w_mode is None:
            return pl.BlockSpec(shape, index_map)
        return pl.BlockSpec(shape, index_map, pipeline_mode=w_mode)

    out = pl.pallas_call(
        gemma_mlp_kernel,
        out_shape=jax.ShapeDtypeStruct((T_pad, H), x.dtype),
        grid_spec=pltpu.PrefetchScalarGridSpec(
            num_scalar_prefetch=0,
            grid=(T_pad // tm, n_i),                            # reduction axis last
            in_specs=[
                pl.BlockSpec((tm, H), lambda i, j: (i, 0)),     # activations
                wspec((H, ti), lambda i, j: (0, j)),            # gate weight tile
                wspec((H, ti), lambda i, j: (0, j)),            # up weight tile
                wspec((ti, H), lambda i, j: (j, 0)),            # down weight tile
            ],
            out_specs=pl.BlockSpec((tm, H), lambda i, j: (i, 0)),  # lane-dense output
            scratch_shapes=[pltpu.VMEM((tm, H), jnp.float32)],     # f32 accumulator
        ),
        compiler_params=pltpu.CompilerParams(
            dimension_semantics=("parallel", "arbitrary"),
            vmem_limit_bytes=vmem_limit,
        ),
    )(x2, wg_t, wu_t, wd_t)

    if T_pad != T:
        out = out[:T]
    return out.reshape(B, S, H)


if __name__ == "__main__":
    # Small config consistent with the module; T=24 exercises token padding,
    # and the explicit tm=16 / ti=128 overrides give a (2, 4) grid exercising
    # the I-axis accumulator path.
    B, S, H, I = 2, 12, 256, 512
    key = jax.random.PRNGKey(0)
    kx, kg, ku, kd = jax.random.split(key, 4)

    x = jax.random.normal(kx, (B, S, H), dtype=jnp.float32)
    # PyTorch nn.Linear weights: gate/up [I, H], down [H, I]; kernel takes transposes.
    wg = jax.random.normal(kg, (I, H), dtype=jnp.float32) * 0.02
    wu = jax.random.normal(ku, (I, H), dtype=jnp.float32) * 0.02
    wd = jax.random.normal(kd, (H, I), dtype=jnp.float32) * 0.02

    # Pure-JAX reference of the exact semantics.
    ref = (_gelu_tanh(x @ wg.T) * (x @ wu.T)) @ wd.T

    # Multi-step reduction path (explicit small tiles).
    out = gemma_mlp(x, wg.T, wu.T, wd.T, tm=16, ti=128)
    out = jax.block_until_ready(out)
    assert out.shape == (B, S, H)
    assert jnp.allclose(out, ref, atol=1e-4, rtol=1e-4)

    # Auto tile-selection path (per-generation defaults).
    out_auto = gemma_mlp(x, wg.T, wu.T, wd.T)
    out_auto = jax.block_until_ready(out_auto)
    assert jnp.allclose(out_auto, ref, atol=1e-4, rtol=1e-4)

    # Production dtype path: bf16 weights/activations, f32 accumulation.
    xb = x.astype(jnp.bfloat16)
    out_bf16 = gemma_mlp(xb, wg.T.astype(jnp.bfloat16), wu.T.astype(jnp.bfloat16),
                         wd.T.astype(jnp.bfloat16), tm=16, ti=128)
    out_bf16 = jax.block_until_ready(out_bf16)
    assert out_bf16.shape == (B, S, H)
    assert jnp.allclose(out_bf16.astype(jnp.float32), ref, atol=2e-2, rtol=2e-1)

    print("KERNEL_OK")
</pallas_src>

<mosaic_0001>
module attributes {stable_mosaic.version = 11 : i64} {
  func.func @gemma_mlp_kernel(%arg0: i32, %arg1: i32, %arg2: memref<16x256xf32, #tpu.memory_space<vmem>>, %arg3: memref<256x128xf32, #tpu.memory_space<vmem>>, %arg4: memref<256x128xf32, #tpu.memory_space<vmem>>, %arg5: memref<128x256xf32, #tpu.memory_space<vmem>>, %arg6: memref<16x256xf32, #tpu.memory_space<vmem>>, %arg7: memref<16x256xf32, #tpu.memory_space<vmem>>) attributes {dimension_semantics = [#tpu.dimension_semantics<parallel>, #tpu.dimension_semantics<arbitrary>], iteration_bounds = array<i64: 2, 4>, scalar_prefetch = 0 : i64, scratch_operands = 1 : i64, tpu.core_type = #tpu.core_type<tc>, window_params = [{transform_indices = @transform_0, window_bounds = array<i64: 16, 256>}, {transform_indices = @transform_1, window_bounds = array<i64: 256, 128>}, {transform_indices = @transform_2, window_bounds = array<i64: 256, 128>}, {transform_indices = @transform_3, window_bounds = array<i64: 128, 256>}, {transform_indices = @transform_4, window_bounds = array<i64: 16, 256>}]} {
    %c0_i32 = arith.constant 0 : i32
    %0 = arith.cmpi eq, %arg1, %c0_i32 : i32
    %1 = arith.extui %0 : i1 to i32
    %c0_i32_0 = arith.constant 0 : i32
    %2 = arith.cmpi ne, %1, %c0_i32_0 : i32
    scf.if %2 {
      %cst_19 = arith.constant 0.000000e+00 : f32
      %30 = vector.broadcast %cst_19 : f32 to vector<16x256xf32>
      %c0_20 = arith.constant 0 : index
      %c0_21 = arith.constant 0 : index
      %31 = vector.load %arg7[%c0_20, %c0_21] : memref<16x256xf32, #tpu.memory_space<vmem>>, vector<16x256xf32>
      tpu.vector_store %arg7[%c0_20, %c0_21], %30 {strides = array<i32>} : memref<16x256xf32, #tpu.memory_space<vmem>>, vector<16x256xf32>,
    } else {
    }
    %c0 = arith.constant 0 : index
    %c0_1 = arith.constant 0 : index
    %3 = vector.load %arg2[%c0, %c0_1] : memref<16x256xf32, #tpu.memory_space<vmem>>, vector<16x256xf32>
    %c0_2 = arith.constant 0 : index
    %c0_3 = arith.constant 0 : index
    %4 = vector.load %arg3[%c0_2, %c0_3] : memref<256x128xf32, #tpu.memory_space<vmem>>, vector<256x128xf32>
    %cst = arith.constant dense<0.000000e+00> : vector<16x128xf32>
    %5 = tpu.matmul %3, %4, %cst {dimension_numbers = #tpu.dot_dimension_numbers<[1], [0], [0], [1], [0, 0, 1, 1], [], []>} : vector<16x256xf32>, vector<256x128xf32>, vector<16x128xf32> -> vector<16x128xf32>
    %c0_4 = arith.constant 0 : index
    %c0_5 = arith.constant 0 : index
    %6 = vector.load %arg4[%c0_4, %c0_5] : memref<256x128xf32, #tpu.memory_space<vmem>>, vector<256x128xf32>
    %cst_6 = arith.constant dense<0.000000e+00> : vector<16x128xf32>
    %7 = tpu.matmul %3, %6, %cst_6 {dimension_numbers = #tpu.dot_dimension_numbers<[1], [0], [0], [1], [0, 0, 1, 1], [], []>} : vector<16x256xf32>, vector<256x128xf32>, vector<16x128xf32> -> vector<16x128xf32>
    %cst_7 = arith.constant 5.000000e-01 : f32
    %8 = vector.broadcast %cst_7 : f32 to vector<16x128xf32>
    %9 = arith.mulf %8, %5 : vector<16x128xf32>
    %cst_8 = arith.constant 4.471500e-02 : f32
    %10 = vector.broadcast %cst_8 : f32 to vector<16x128xf32>
    %11 = arith.mulf %10, %5 : vector<16x128xf32>
    %12 = arith.mulf %11, %5 : vector<16x128xf32>
    %13 = arith.mulf %12, %5 : vector<16x128xf32>
    %14 = arith.addf %5, %13 : vector<16x128xf32>
    %cst_9 = arith.constant 0.797884583 : f32
    %15 = vector.broadcast %cst_9 : f32 to vector<16x128xf32>
    %16 = arith.mulf %15, %14 : vector<16x128xf32>
    %17 = math.tanh %16 : vector<16x128xf32>
    %cst_10 = arith.constant 1.000000e+00 : f32
    %18 = vector.broadcast %cst_10 : f32 to vector<16x128xf32>
    %19 = arith.addf %18, %17 : vector<16x128xf32>
    %20 = arith.mulf %9, %19 : vector<16x128xf32>
    %21 = arith.mulf %20, %7 : vector<16x128xf32>
    %c0_11 = arith.constant 0 : index
    %c0_12 = arith.constant 0 : index
    %22 = vector.load %arg7[%c0_11, %c0_12] : memref<16x256xf32, #tpu.memory_space<vmem>>, vector<16x256xf32>
    %c0_13 = arith.constant 0 : index
    %c0_14 = arith.constant 0 : index
    %23 = vector.load %arg5[%c0_13, %c0_14] : memref<128x256xf32, #tpu.memory_space<vmem>>, vector<128x256xf32>
    %cst_15 = arith.constant dense<0.000000e+00> : vector<16x256xf32>
    %24 = tpu.matmul %21, %23, %cst_15 {dimension_numbers = #tpu.dot_dimension_numbers<[1], [0], [0], [1], [0, 0, 1, 1], [], []>} : vector<16x128xf32>, vector<128x256xf32>, vector<16x256xf32> -> vector<16x256xf32>
    %25 = arith.addf %22, %24 : vector<16x256xf32>
    %c0_16 = arith.constant 0 : index
    %c0_17 = arith.constant 0 : index
    %26 = vector.load %arg7[%c0_16, %c0_17] : memref<16x256xf32, #tpu.memory_space<vmem>>, vector<16x256xf32>
    tpu.vector_store %arg7[%c0_16, %c0_17], %25 {strides = array<i32>} : memref<16x256xf32, #tpu.memory_space<vmem>>, vector<16x256xf32>,
    %c3_i32 = arith.constant 3 : i32
    %27 = arith.cmpi eq, %arg1, %c3_i32 : i32
    %28 = arith.extui %27 : i1 to i32
    %c0_i32_18 = arith.constant 0 : i32
    %29 = arith.cmpi ne, %28, %c0_i32_18 : i32
    scf.if %29 {
      %c0_19 = arith.constant 0 : index
      %c0_20 = arith.constant 0 : index
      %30 = vector.load %arg7[%c0_19, %c0_20] : memref<16x256xf32, #tpu.memory_space<vmem>>, vector<16x256xf32>
      %c0_21 = arith.constant 0 : index
      %c0_22 = arith.constant 0 : index
      %31 = vector.load %arg6[%c0_21, %c0_22] : memref<16x256xf32, #tpu.memory_space<vmem>>, vector<16x256xf32>
      tpu.vector_store %arg6[%c0_21, %c0_22], %30 {strides = array<i32>} : memref<16x256xf32, #tpu.memory_space<vmem>>, vector<16x256xf32>,
    } else {
    }
    return
  }
  func.func @transform_0(%arg0: i32, %arg1: i32) -> (i32, i32) {
    %c0_i32 = arith.constant 0 : i32
    %c0_i32_0 = arith.constant 0 : i32
    return %arg0, %c0_i32 : i32, i32
  }
  func.func @transform_1(%arg0: i32, %arg1: i32) -> (i32, i32) {
    %c0_i32 = arith.constant 0 : i32
    %c0_i32_0 = arith.constant 0 : i32
    return %c0_i32, %arg1 : i32, i32
  }
  func.func @transform_2(%arg0: i32, %arg1: i32) -> (i32, i32) {
    %c0_i32 = arith.constant 0 : i32
    %c0_i32_0 = arith.constant 0 : i32
    return %c0_i32, %arg1 : i32, i32
  }
  func.func @transform_3(%arg0: i32, %arg1: i32) -> (i32, i32) {
    %c0_i32 = arith.constant 0 : i32
    %c0_i32_0 = arith.constant 0 : i32
    return %arg1, %c0_i32 : i32, i32
  }
  func.func @transform_4(%arg0: i32, %arg1: i32) -> (i32, i32) {
    %c0_i32 = arith.constant 0 : i32
    %c0_i32_0 = arith.constant 0 : i32
    return %arg0, %c0_i32 : i32, i32
  }
}

</mosaic_0001>

<bundles_post_ra>
// kernel: tpu_custom_call.1
= control target key start
LH: loop header
LB: loop body
LE: loop exit
PB: predicated region body
PF: predicated region fallthrough
CT: control target
= control target key end

     0   :  { %s2056_s0 = inlined_call_operand.hbm [shape: f32[32,256], index: 0, kind: input, shape index: {}]   ;;  %s2057_s1 = inlined_call_operand.hbm [shape: f32[256,512], index: 1, kind: input, shape index: {}]   ;;  %s2058_s2 = inlined_call_operand.hbm [shape: f32[256,512], index: 2, kind: input, shape index: {}]   ;;  %s2059_s3 = inlined_call_operand.hbm [shape: f32[512,256], index: 3, kind: input, shape index: {}]   ;;  %s2060_s4 = inlined_call_operand.hbm [shape: f32[32,256], index: 4, kind: output, shape index: {}]  }
   0x1   :  { %2082 = sst [smem:[#allocation26_spill]] %s2056_s0 }
   0x2   :  { %2083 = sst [smem:[#allocation27_spill]] %s2057_s1 }
   0x3   :  { %2084 = sst [smem:[#allocation28_spill]] %s2060_s4 }
   0x4   :  { %9 = vsyncpa [#allocation4], 0 }
   0x5   :  { %11 = vsyncpa [#allocation4 + $0x1], 0 }
   0x6   :  { %12 = vsyncpa [#allocation7], 0 }
   0x7   :  { %14 = vsyncpa [#allocation7 + $0x1], 0 }
   0x8   :  { %15 = vsyncpa [#allocation10], 0 }
   0x9   :  { %17 = vsyncpa [#allocation10 + $0x1], 0 }
   0xa   :  { %18 = vsyncpa [#allocation5], 0 }
   0xb   :  { %20 = vsyncpa [#allocation5 + $0x1], 0  ;;  %s1537_s15 = smov 0   ;;  %s1539_s16 = smov 0  }
   0xc   :  { %s1541_s17 = smov 0   ;;  %s1543_s18 = smov 0  }
   0xd   :  { %s1545_s19 = smov 0   ;;  %s1547_s20 = smov 0  }
   0xe   :  { %s1549_s21 = smov 0   ;;  %s1551_s22 = smov 0  }
   0xf   :  { %s1553_s23 = smov 0   ;;  %s1555_s24 = smov 0  }
  0x10   :  { %s1557_s25 = smov 0  }
  0x11 LB: > { %2085 = sst [smem:[#allocation16_spill]] %s1460_s16  ;;  %s35_s26 = sadd.s32 1, %s1488_s23  ;;  %s1496_s25 = sphi %s1557_s25, %s26_s25   ;;  %s1492_s24 = sphi %s1555_s24, %s2135_s24   ;;  %s1488_s23 = sphi %s1553_s23, %s2141_s23   ;;  %s1484_s22 = sphi %s1551_s22, %s2133_s22   ;;  %s1480_s21 = sphi %s1549_s21, %s2140_s21   ;;  %s1476_s20 = sphi %s1547_s20, %s2132_s20   ;;  %s1472_s19 = sphi %s1545_s19, %s2139_s19   ;;  %s1468_s18 = sphi %s1543_s18, %s2138_s18   ;;  %s1464_s17 = sphi %s1541_s17, %s2137_s17   ;;  %s1460_s16 = sphi %s1539_s16, %s2136_s16   ;;  %s1456_s15 = sphi %s1537_s15, %s2129_s15  }
  0x12   : > { %2086 = sst [smem:[#allocation17_spill]] %s1476_s20  ;;  %p2065_p0 = scmp.eq.s32.totalorder %s1496_s25, 0 }
  0x13   : > { %2087 = sst [smem:[#allocation18_spill]] %s1480_s21  ;;  %p1594_p1 = scmp.ge.s32.totalorder %s35_s26, 4 }
  0x14   : > { %2088 = sst [smem:[#allocation19_spill]] %s1484_s22  ;;  %s71_s28 = sadd.s32 1, %s1464_s17 }
  0x15   : > { %2089 = sst [smem:[#allocation20_spill]] %s1492_s24  ;;  %p78_p2 = scmp.ne.s32.totalorder %s1464_s17, %s1460_s16 }
  0x16   : > { %s2090_s27 = scalar_select %p1594_p1, 1, 0 }
  0x17   : > { %s2143_s26 = smov (%p1594_p1, %s35_s26), 0  ;;  %p80_p4 = por %p78_p2, %p2065_p0 }
  0x18   : > { %2091 = sst [smem:[#allocation21_spill]] %s2143_s26  ;;  %s68_s29 = ssub.s32 %s1488_s23, %s2143_s26 }
  0x19   : > { %p2064_p5 = scmp.lt.s32.totalorder %s1496_s25, 8  ;;  %p69_p6 = scmp.eq.s32.totalorder %s68_s29, 0 }
  0x1a   : > { %s208_s30 = sand.u32 1, %s1496_s25   ;;  %s2061_s5 = sand.u32 1, %s1464_s17  }
  0x1b   : > { %s1615_s6 = scalar_select %p69_p6, %s1464_s17, %s71_s28  }
  0x1c   : > { %s1619_s7 = sshll.u32 %s2061_s5, 8  ;;  %s901_s8 = sshll.u32 %s1488_s23, 7 }
  0x1d   : > { %2092 = sst [smem:[#allocation22_spill]] %s1615_s6  ;;  %s2093_s1 = sld [smem:[#allocation27_spill]] }
  0x1e   : > { %s212_s12 = scalar_lea.vmem [#allocation6], %s1619_s7  ;;  %p1630_p7 = pnand %p2064_p5, %p80_p4 }
  0x1f   : > { %s218_s13 = sshll.u32 %s212_s12, 4  ;;  %s1639_s9 = scalar_lea.hbm %s2058_s2, %s901_s8  ;;  %s1634_s13 = int_to_ptr.vmem [resolvable:$true] %s218_s13 }
  0x20   : > { %s2094_s14 = scalar_select %p1630_p7, 1, 0 }
  0x21   : > { %s1641_s10 = scalar_lea.sflag [#allocation7], %s208_s30  ;;  %p1647_p9 = pneg %p1630_p7 }
  0x23   : > { %s1625_s11 = scalar_lea.hbm %s2093_s1, %s901_s8  ;;  %s1251_s4 = scalar_lea.hbm %s2093_s1, 16384 }
  0x24   : > { %s1246_s5 = scalar_lea.hbm %s1625_s11, 4096  ;;  %p1252_p12 = scmp.lt.u32.totalorder %s1625_s11, %s2093_s1 }
  0x25   : > { %p1247_p8 = scmp.ne.s32.totalorder %s1625_s11, %s1246_s5  ;;  %p1253_p13 = scmp.lt.u32.totalorder %s1251_s4, %s1246_s5 }
  0x26   : > { %p1255_p4 = scmp.lt.u32.totalorder %s1246_s5, %s1625_s11 }
  0x27   : > { %p1249_p10 = pnand %p1647_p9, %p1247_p8  ;;  %p1254_p2 = por %p1253_p13, %p1252_p12 }
  0x29   : > { %p1250_p11 = pneg %p1249_p10  ;;  %p1256_p6 = por %p1255_p4, %p1254_p2 }
  0x2b   : > { %p1257_p5 = pnand %p1256_p6, %p1250_p11 }
  0x2d   : > { %1260 = shalt.err (!%p1257_p5)
}
  0x2e   : > { %s1261_s30 = scalar_lea.vmem %s1634_s13, 4096  ;;  %s1498_s26 = smov [#allocation6]  }
  0x2f   : > { %p1262_p8 = scmp.ne.s32.totalorder %s1634_s13, %s1261_s30  ;;  %s1266_s6 = sshll.u32 %s1498_s26, 4  ;;  %s1267_s6 = int_to_ptr.vmem [resolvable:$false] %s1266_s6 }
  0x30   : > { %s1268_s29 = scalar_lea.vmem %s1267_s6, 8192  ;;  %p1269_p0 = scmp.lt.s32.totalorder %s1634_s13, %s1267_s6 }
  0x31   : > { %p1264_p10 = pnand %p1262_p8, %p1647_p9  ;;  %p1270_p1 = scmp.lt.s32.totalorder %s1268_s29, %s1261_s30 }
  0x33   : > { %p1265_p3 = pneg %p1264_p10  ;;  %p1271_p12 = por %p1270_p1, %p1269_p0 }
  0x35   : > { %p1272_p13 = pnand %p1271_p12, %p1265_p3 }
  0x37   : > { %1275 = shalt.err (!%p1272_p13)
}
  0x38   : > { %s2067_s4 = smov 512   ;;  %s2068_s5 = smov 128  }
  0x39   : > { %s2069_s28 = smov 8   ;;  %p908_p0 = scmp.ge.s32.totalorder %s1496_s25, 1 }
  0x3a   : > { %1132 = dma.hbm_to_vmem [thread:$0]  (!%p1630_p7), %s1625_s11, 4096, %s1634_s13, %s1641_s10, %s2067_s4, %s2068_s5, %s2069_s28  }
  0x3b   : > { %p268_p1 = scmp.lt.s32.totalorder %s1496_s25, 9  ;;  %s1681_s30 = sadd.s32 4294967295, %s1496_s25  }
  0x3c   : > { %s893_s26 = sadd.s32 4294967294, %s1496_s25   ;;  %s38_s6 = sadd.s32 1, %s1492_s24 }
  0x3d   : > { %p1676_p3 = pnand %p908_p0, %p268_p1  ;;  %p2097_p5 = scmp.ne.s32.totalorder %s2090_s27, 0 }
  0x3e   : > { %s45_s11 = sadd.s32 1, %s1476_s20  ;;  %p52_p11 = scmp.ne.s32.totalorder %s1476_s20, %s1472_s19 }
  0x3f   : > { %s2096_s8 = scalar_select %p1676_p3, 1, 0 }
  0x40   : > { %s2145_s6 = smov (!%p2097_p5, %s38_s6), %s1492_s24  ;;  %p58_p4 = scmp.ne.s32.totalorder %s1472_s19, %s1468_s18 }
  0x41   : > { %p40_p2 = scmp.ge.s32.totalorder %s2145_s6, 2  ;;  %p2098_p6 = scmp.eq.s32.totalorder %s1496_s25, 0 }
  0x42   : > { %p59_p10 = scmp.eq.s32.totalorder %s1681_s30, 0  ;;  %p2102_p13 = scmp.ne.s32.totalorder %s1460_s16, %s1456_s15 }
  0x43   : > { %p1695_p8 = por %p2098_p6, %p52_p11  ;;  %s2147_s6 = smov (%p40_p2, %s2145_s6), 0 }
  0x44   : > { %2100 = sst [smem:[#allocation23_spill]] %s2147_s6  ;;  %p1705_p12 = por %p59_p10, %p58_p4 }
  0x45   : > { %p1712_p0 = por %p2102_p13, %p59_p10  ;;  %s42_s4 = ssub.s32 %s1492_s24, %s2147_s6 }
  0x46   : > { %s2101_s27 = scalar_select %p1705_p12, 1, 0 }
  0x47   : > { %s2103_s29 = scalar_select %p1712_p0, 1, 0 }
  0x48   : > { %p160_p1 = scmp.eq.s32.totalorder %s1681_s30, 7  ;;  %p43_p5 = scmp.eq.s32.totalorder %s42_s4, 0 }
  0x49   : > { %2104 = sst [smem:[#allocation24_spill]] %s2103_s29  ;;  %p166_p6 = scmp.eq.s32.totalorder %s893_s26, 7 }
  0x4a   : > { %p1719_p3 = por %p160_p1, %p52_p11  ;;  %s186_s28 = sand.u32 1, %s1476_s20  }
  0x4b   : > { %s1725_s1 = scalar_select %p43_p5, %s1476_s20, %s45_s11  }
  0x4c   : > { %s2105_s5 = scalar_select %p1719_p3, 1, 0 }
  0x4d   : > { %2106 = sst [smem:[#allocation25_spill]] %s1725_s1  ;;  %p1730_p2 = por %p166_p6, %p58_p4 }
  0x4e   : > { %s896_s15 = sshll.u32 %s186_s28, 5  ;;  %s923_s21 = sshll.u32 %s1492_s24, 9 }
  0x4f   : > { %s2107_s22 = scalar_select %p1730_p2, 1, 0 }
  0x50   : > { %s2108_s0 = sld [smem:[#allocation26_spill]]  ;;  %s190_s4 = scalar_lea.vmem [#allocation3], %s896_s15 }
  0x51   : > { %s198_s26 = sshll.u32 %s190_s4, 4  ;;  %p2109_p11 = scmp.lt.s32.totalorder %s1496_s25, 8  ;;  %s1748_s26 = int_to_ptr.vmem [resolvable:$true] %s198_s26 }
  0x52   : > { %s1750_s24 = scalar_lea.sflag [#allocation4], %s186_s28 }
  0x53   : > { %p1744_p10 = pnand %p2109_p11, %p1695_p8 }
  0x55   : > { %p1278_p13 = pneg %p1744_p10 }
  0x56   : > { %s1738_s6 = scalar_lea.hbm %s2108_s0, %s923_s21  ;;  %s1281_s29 = scalar_lea.hbm %s2108_s0, 1024 }
  0x57   : > { %s1276_s16 = scalar_lea.hbm %s1738_s6, 512  ;;  %p1282_p8 = scmp.lt.u32.totalorder %s1738_s6, %s2108_s0 }
  0x58   : > { %p1277_p4 = scmp.ne.s32.totalorder %s1738_s6, %s1276_s16  ;;  %p1283_p6 = scmp.lt.u32.totalorder %s1281_s29, %s1276_s16 }
  0x59   : > { %p1285_p2 = scmp.lt.u32.totalorder %s1276_s16, %s1738_s6 }
  0x5a   : > { %p1279_p1 = pnand %p1278_p13, %p1277_p4  ;;  %p1284_p11 = por %p1283_p6, %p1282_p8 }
  0x5c   : > { %p1280_p5 = pneg %p1279_p1  ;;  %p1286_p3 = por %p1285_p2, %p1284_p11 }
  0x5e   : > { %p1287_p0 = pnand %p1286_p3, %p1280_p5 }
  0x60   : > { %1290 = shalt.err (!%p1287_p0)
}
  0x61   : > { %s1291_s28 = scalar_lea.vmem %s1748_s26, 512  ;;  %s1502_s21 = smov [#allocation3]  }
  0x62   : > { %p1292_p4 = scmp.ne.s32.totalorder %s1748_s26, %s1291_s28  ;;  %s1296_s13 = sshll.u32 %s1502_s21, 4  ;;  %s1297_s13 = int_to_ptr.vmem [resolvable:$false] %s1296_s13 }
  0x63   : > { %s1298_s15 = scalar_lea.vmem %s1297_s13, 1024  ;;  %p1299_p7 = scmp.lt.s32.totalorder %s1748_s26, %s1297_s13 }
  0x64   : > { %p1294_p1 = pnand %p1292_p4, %p1278_p13  ;;  %p1300_p8 = scmp.lt.s32.totalorder %s1298_s15, %s1291_s28 }
  0x66   : > { %p1295_p12 = pneg %p1294_p1  ;;  %p1301_p6 = por %p1300_p8, %p1299_p7 }
  0x68   : > { %p1302_p2 = pnand %p1301_p6, %p1295_p12 }
  0x6a   : > { %1305 = shalt.err (!%p1302_p2)
}
  0x6b   : > { %s2081_s16 = smov 256   ;;  %s1504_s29 = smov 16  }
  0x6c   : > { %1129 = dma.hbm_to_vmem [thread:$0]  (!%p1744_p10), %s1738_s6, 512, %s1748_s26, %s1750_s24, %s2081_s16, %s2081_s16, %s1504_s29  }
  0x6d   : > { %s232_s4 = scalar_lea.vmem [#allocation8], %s1619_s7  ;;  %s925_s21 = sshll.u32 %s1488_s23, 12 }
  0x6e   : > { %s238_s28 = sshll.u32 %s232_s4, 4  ;;  %s1306_s13 = scalar_lea.hbm %s1639_s9, 4096  ;;  %s1782_s28 = int_to_ptr.vmem [resolvable:$true] %s238_s28 }
  0x6f   : > { %p1307_p7 = scmp.ne.s32.totalorder %s1639_s9, %s1306_s13  ;;  %s1311_s1 = scalar_lea.hbm %s2058_s2, 16384 }
  0x70   : > { %p1312_p0 = scmp.lt.u32.totalorder %s1639_s9, %s2058_s2  ;;  %p1313_p13 = scmp.lt.u32.totalorder %s1311_s1, %s1306_s13 }
  0x71   : > { %p1309_p3 = pnand %p1307_p7, %p1647_p9  ;;  %p1315_p5 = scmp.lt.u32.totalorder %s1306_s13, %s1639_s9 }
  0x72   : > { %p1314_p10 = por %p1313_p13, %p1312_p0 }
  0x73   : > { %p1310_p12 = pneg %p1309_p3 }
  0x74   : > { %p1316_p11 = por %p1315_p5, %p1314_p10 }
  0x76   : > { %p1317_p4 = pnand %p1316_p11, %p1310_p12 }
  0x78   : > { %1320 = shalt.err (!%p1317_p4)
}
  0x79   : > { %s1321_s24 = scalar_lea.vmem %s1782_s28, 4096  ;;  %s1505_s0 = smov [#allocation8]  }
  0x7a   : > { %p1322_p1 = scmp.ne.s32.totalorder %s1782_s28, %s1321_s24  ;;  %s1326_s6 = sshll.u32 %s1505_s0, 4  ;;  %s1327_s6 = int_to_ptr.vmem [resolvable:$false] %s1326_s6 }
  0x7b   : > { %s1328_s20 = scalar_lea.vmem %s1327_s6, 8192  ;;  %p1329_p2 = scmp.lt.s32.totalorder %s1782_s28, %s1327_s6 }
  0x7c   : > { %p1324_p8 = pnand %p1322_p1, %p1647_p9  ;;  %p1330_p7 = scmp.lt.s32.totalorder %s1328_s20, %s1321_s24 }
  0x7e   : > { %p1325_p6 = pneg %p1324_p8  ;;  %p1331_p3 = por %p1330_p7, %p1329_p2 }
  0x80   : > { %p1332_p0 = pnand %p1331_p3, %p1325_p6 }
  0x82   : > { %1335 = shalt.err (!%p1332_p0)
}
  0x83   : > { %p2111_p12 = scmp.ne.s32.totalorder %s2094_s14, 0  ;;  %s2112_s1 = smov 8  }
  0x84   : > { %s2113_s26 = smov 128   ;;  %s2114_s4 = smov 512  }
  0x85   : > { %1135 = dma.hbm_to_vmem [thread:$0]  (!%p2111_p12), %s1639_s9, 4096, %s1782_s28, %s1641_s10, %s2114_s4, %s2113_s26, %s2112_s1  }
  0x86   : > { %s1815_s11 = scalar_lea.hbm %s2059_s3, %s925_s21  ;;  %s252_s24 = scalar_lea.vmem [#allocation9], %s1619_s7 }
  0x87   : > { %s260_s0 = sshll.u32 %s252_s24, 4  ;;  %s2115_s6 = sand.u32 1, %s1464_s17   ;;  %s1818_s0 = int_to_ptr.vmem [resolvable:$true] %s260_s0 }
  0x88   : > { %s1822_s20 = scalar_lea.sflag [#allocation10], %s2115_s6  ;;  %s1336_s16 = scalar_lea.hbm %s1815_s11, 4096 }
  0x89   : > { %p1337_p13 = scmp.ne.s32.totalorder %s1815_s11, %s1336_s16  ;;  %s1341_s28 = scalar_lea.hbm %s2059_s3, 16384 }
  0x8a   : > { %p1342_p11 = scmp.lt.u32.totalorder %s1815_s11, %s2059_s3  ;;  %p1343_p4 = scmp.lt.u32.totalorder %s1341_s28, %s1336_s16 }
  0x8b   : > { %p1339_p10 = pnand %p1337_p13, %p1647_p9  ;;  %p1345_p8 = scmp.lt.u32.totalorder %s1336_s16, %s1815_s11 }
  0x8c   : > { %p1344_p1 = por %p1343_p4, %p1342_p11 }
  0x8d   : > { %p1340_p5 = pneg %p1339_p10 }
  0x8e   : > { %p1346_p6 = por %p1345_p8, %p1344_p1 }
  0x90   : > { %p1347_p2 = pnand %p1346_p6, %p1340_p5 }
  0x92   : > { %1350 = shalt.err (!%p1347_p2)
}
  0x93   : > { %s1351_s7 = scalar_lea.vmem %s1818_s0, 4096  ;;  %s1506_s26 = smov [#allocation9]  }
  0x94   : > { %p1352_p7 = scmp.ne.s32.totalorder %s1818_s0, %s1351_s7  ;;  %s1356_s4 = sshll.u32 %s1506_s26, 4  ;;  %s1357_s4 = int_to_ptr.vmem [resolvable:$false] %s1356_s4 }
  0x95   : > { %s1358_s13 = scalar_lea.vmem %s1357_s4, 8192  ;;  %p1359_p13 = scmp.lt.s32.totalorder %s1818_s0, %s1357_s4 }
  0x96   : > { %p1354_p3 = pnand %p1352_p7, %p1647_p9  ;;  %p1360_p10 = scmp.lt.s32.totalorder %s1358_s13, %s1351_s7 }
  0x98   : > { %p1355_p0 = pneg %p1354_p3  ;;  %p1361_p11 = por %p1360_p10, %p1359_p13 }
  0x9a   : > { %p1362_p4 = pnand %p1361_p11, %p1355_p0 }
  0x9c   : > { %1365 = shalt.err (!%p1362_p4)
}
  0x9d   : > { %s2116_s16 = smov 256   ;;  %p2117_p9 = scmp.ne.s32.totalorder %s2096_s8, 0 }
  0x9e   : > { %1138 = dma.hbm_to_vmem [thread:$0]  (!%p2111_p12), %s1815_s11, 4096, %s1818_s0, %s1822_s20, %s2116_s16, %s2116_s16, %s1504_s29  }
  0x9f   : > { %272 = sbr.rel (%p2117_p9) target bundleno = 728 (0x2d8), region = 36  ;;  %s1852_s12 = sand.u32 (!%p2117_p9), 1, %s1472_s19  }
  0xa0   : > { %s909_s15 = sshll.u32 (!%p2117_p9), %s1852_s12, 5  ;;  %s275_s24 = scalar_lea.sflag (!%p2117_p9), [#allocation4], %s1852_s12 }
  0xa1   : > { %s1856_s6 = scalar_lea.vmem (!%p2117_p9), [#allocation3], %s909_s15  ;;  %p2118_p5 = scmp.ne.s32.totalorder (!%p2117_p9), %s2101_s27, 0 }
  0xa6   : > { %1439 = dma.done.wait (%p2118_p5), %s275_s24, 512  }
  0xa7   : > { %1441 = vsyncadd (%p2118_p5), %s275_s24, 4294966784  ;;  %s2119_s14 = sld [smem:[#allocation16_spill]]  ;;  %s2120_s29 = sld [smem:[#allocation24_spill]] }
  0xa8   : > { %s283_s8 = sand.u32 1, %s1681_s30  }
  0xa9   : > { %s284_s20 = scalar_lea.sflag [#allocation7], %s283_s8 }
  0xad   : > { %s285_s11 = sand.u32 1, %s2119_s14   ;;  %p2121_p12 = scmp.ne.s32.totalorder %s2120_s29, 0 }
  0xae   : > { %s910_s0 = sshll.u32 %s285_s11, 8 }
  0xaf   : > { %s1864_s9 = scalar_lea.vmem [#allocation6], %s910_s0 }
  0xb0   : > { %1443 = dma.done.wait (%p2121_p12), %s284_s20, 8192  }
  0xb1   : > { %1445 = vsyncadd (%p2121_p12), %s284_s20, 4294959104  ;;  %s1870_s10 = scalar_lea.vmem [#allocation8], %s910_s0  ;;  %s302_s28 = scalar_lea.sflag [#allocation10], %s285_s11 }
  0xb2   : > { %s1872_s27 = scalar_lea.vmem [#allocation9], %s910_s0 }
  0xb3   : > { %1447 = dma.done.wait (%p2121_p12), %s302_s28, 4096  }
  0xb4   : > { %1449 = vsyncadd (%p2121_p12), %s302_s28, 4294963200  ;;  %s1878_s30 = scalar_lea.vmem [#allocation11], %s909_s15  ;;  %s2122_s21 = sld [smem:[#allocation18_spill]] }
  0xba   : > { %p914_p1 = scmp.ne.s32.totalorder %s2122_s21, 0 }
  0xbb   : > { %v1507_v0 = vmov (!%p914_p1), 0.0  }
  0xbc   : > { %351 = sbr.rel (%p914_p1) target bundleno = 195 (0xc3), region = 56  ;;  %352 = vst [vmem:[#allocation2] sm:$0xff] (!%p914_p1), %v1507_v0  ;;  %353 = vst [vmem:[#allocation2 + $0x8] sm:$0xff] (!%p914_p1), %v1507_v0 }
  0xbd   : > { %354 = vst [vmem:[#allocation2 + $0x10] sm:$0xff] (!%p914_p1), %v1507_v0  ;;  %355 = vst [vmem:[#allocation2 + $0x18] sm:$0xff] (!%p914_p1), %v1507_v0 }
  0xc3 PF: > { %v376_v1 = vld [vmem:[%s1864_s9 + $0x80] sm:$0xff]  ;;  %v377_v2 = vld [vmem:[%s1864_s9 + $0x88] sm:$0xff]  ;;  %v378_v6 = vld [vmem:[%s1864_s9 + $0x90] sm:$0xff]  ;;  %s2123_s1 = sld [smem:[#allocation18_spill]] }
  0xc4   : > { %v360_v3 = vld [vmem:[%s1864_s9] sm:$0xff]  ;;  %v1004_v4 = vpack.c.bf16 %v377_v2, %v376_v1  ;;  %v361_v5 = vld [vmem:[%s1864_s9 + $0x8] sm:$0xff]  ;;  %v379_v7 = vld [vmem:[%s1864_s9 + $0x98] sm:$0xff] }
  0xc5   : > { %v1006_v8 = vpack.c.bf16 %v361_v5, %v360_v3  ;;  %v1008_v9 = vpack.c.bf16 %v379_v7, %v378_v6  ;;  %v362_v10 = vld [vmem:[%s1864_s9 + $0x10] sm:$0xff]  ;;  %v363_v11 = vld [vmem:[%s1864_s9 + $0x18] sm:$0xff]  ;;  %v380_v12 = vld [vmem:[%s1864_s9 + $0xa0] sm:$0xff] }
  0xc6   : > { %1005 = vmatprep.subr.bf16.mxu0 %v1004_v4  ;;  %v381_v13 = vld [vmem:[%s1864_s9 + $0xa8] sm:$0xff]  ;;  %v1010_v14 = vpack.c.bf16 %v363_v11, %v362_v10  ;;  %v364_v16 = vld [vmem:[%s1864_s9 + $0x20] sm:$0xff]  ;;  %v382_v18 = vld [vmem:[%s1864_s9 + $0xb0] sm:$0xff] }
  0xc7   : > { %1007 = vmatpush3.bf16.msra.mxu0 %v1006_v8  ;;  %v1012_v15 = vpack.c.bf16 %v381_v13, %v380_v12  ;;  %v365_v17 = vld [vmem:[%s1864_s9 + $0x28] sm:$0xff]  ;;  %v383_v19 = vld [vmem:[%s1864_s9 + $0xb8] sm:$0xff]  ;;  %v366_v21 = vld [vmem:[%s1864_s9 + $0x30] sm:$0xff] }
  0xc8   : > { %1009 = vmatprep.subr.bf16.mxu0 %v1008_v9  ;;  %v1014_v20 = vpack.c.bf16 %v365_v17, %v364_v16  ;;  %v483_v22 = vld [vmem:[%s1870_s10 + $0x80] sm:$0xff]  ;;  %v1016_v23 = vpack.c.bf16 %v383_v19, %v382_v18  ;;  %v367_v24 = vld [vmem:[%s1864_s9 + $0x38] sm:$0xff]  ;;  %v484_v26 = vld [vmem:[%s1870_s10 + $0x88] sm:$0xff] }
  0xc9   : > { %v384_v25 = vld [vmem:[%s1864_s9 + $0xc0] sm:$0xff]  ;;  %v385_v27 = vld [vmem:[%s1864_s9 + $0xc8] sm:$0xff]  ;;  %v1036_v28 = vpack.c.bf16 %v484_v26, %v483_v22  ;;  %v485_v33 = vld [vmem:[%s1870_s10 + $0x90] sm:$0xff]  ;;  %v1018_v35 = vpack.c.bf16 %v367_v24, %v366_v21  ;;  %p915_p8 = scmp.ne.s32.totalorder %s2123_s1, 3 }
  0xca   : > { %v467_v29 = vld [vmem:[%s1870_s10] sm:$0xff]  ;;  %v468_v30 = vld [vmem:[%s1870_s10 + $0x8] sm:$0xff]  ;;  %v486_v34 = vld [vmem:[%s1870_s10 + $0x98] sm:$0xff]  ;;  %v1020_v40 = vpack.c.bf16 %v385_v27, %v384_v25 }
  0xcb   : > { %1011 = vmatpush3.bf16.msra.mxu0 %v1010_v14  ;;  %v368_v31 = vld [vmem:[%s1864_s9 + $0x40] sm:$0xff]  ;;  %v1038_v32 = vpack.c.bf16 %v468_v30, %v467_v29  ;;  %v369_v36 = vld [vmem:[%s1864_s9 + $0x48] sm:$0xff]  ;;  %v386_v37 = vld [vmem:[%s1864_s9 + $0xd0] sm:$0xff]  ;;  %1037 = vmatprep.subr.bf16.mxu1 %v1036_v28  ;;  %v1040_v38 = vpack.c.bf16 %v486_v34, %v485_v33 }
  0xcc   : > { %1013 = vmatprep.subr.bf16.mxu0 %v1012_v15  ;;  %v469_v39 = vld [vmem:[%s1870_s10 + $0x10] sm:$0xff]  ;;  %v387_v41 = vld [vmem:[%s1864_s9 + $0xd8] sm:$0xff]  ;;  %v357_v43 = vld [vmem:[%s1856_s6 + $0x8] sm:$0xff]  ;;  %v1022_v50 = vpack.c.bf16 %v369_v36, %v368_v31 }
  0xcd   : > { %1039 = vmatpush3.bf16.msra.mxu1 %v1038_v32  ;;  %v470_v42 = vld [vmem:[%s1870_s10 + $0x18] sm:$0xff]  ;;  %456 = vmatprep.mubr.f32.mxu0 %v357_v43  ;;  %v487_v45 = vld [vmem:[%s1870_s10 + $0xa0] sm:$0xff]  ;;  %v488_v46 = vld [vmem:[%s1870_s10 + $0xa8] sm:$0xff]  ;;  %v1024_v53 = vpack.c.bf16 %v387_v41, %v386_v37 }
  0xce   : > { %1041 = vmatprep.subr.bf16.mxu1 %v1040_v38  ;;  %v1042_v44 = vpack.c.bf16 %v470_v42, %v469_v39  ;;  %v471_v47 = vld [vmem:[%s1870_s10 + $0x20] sm:$0xff]  ;;  %v1044_v48 = vpack.c.bf16 %v488_v46, %v487_v45  ;;  %v472_v49 = vld [vmem:[%s1870_s10 + $0x28] sm:$0xff]  ;;  %563 = vmatprep.mubr.f32.mxu1 %v357_v43  ;;  %v489_v51 = vld [vmem:[%s1870_s10 + $0xb0] sm:$0xff] }
  0xcf   : > { %1015 = vmatpush3.bf16.msra.mxu0 %v1014_v20  ;;  %v490_v52 = vld [vmem:[%s1870_s10 + $0xb8] sm:$0xff]  ;;  %v370_v54 = vld [vmem:[%s1864_s9 + $0x50] sm:$0xff]  ;;  %v388_v56 = vld [vmem:[%s1864_s9 + $0xe0] sm:$0xff]  ;;  %v1046_v57 = vpack.c.bf16 %v472_v49, %v471_v47 }
  0xd0   : > { %1017 = vmatprep.subr.bf16.mxu0 %v1016_v23  ;;  %v371_v55 = vld [vmem:[%s1864_s9 + $0x58] sm:$0xff]  ;;  %v389_v58 = vld [vmem:[%s1864_s9 + $0xe8] sm:$0xff]  ;;  %v1048_v59 = vpack.c.bf16 %v490_v52, %v489_v51  ;;  %v473_v60 = vld [vmem:[%s1870_s10 + $0x30] sm:$0xff] }
  0xd1   : > { %1043 = vmatpush3.bf16.msra.mxu1 %v1042_v44  ;;  %v474_v61 = vld [vmem:[%s1870_s10 + $0x38] sm:$0xff]  ;;  %v491_v62 = vld [vmem:[%s1870_s10 + $0xc0] sm:$0xff]  ;;  %v492_v63 = vld [vmem:[%s1870_s10 + $0xc8] sm:$0xff]  ;;  %v1026_v0 = vpack.c.bf16 %v371_v55, %v370_v54  ;;  %v1028_v1 = vpack.c.bf16 %v389_v58, %v388_v56 }
  0xd2   : > { %1045 = vmatprep.subr.bf16.mxu1 %v1044_v48  ;;  %v372_v2 = vld [vmem:[%s1864_s9 + $0x60] sm:$0xff]  ;;  %v373_v3 = vld [vmem:[%s1864_s9 + $0x68] sm:$0xff]  ;;  %v390_v4 = vld [vmem:[%s1864_s9 + $0xf0] sm:$0xff]  ;;  %v1050_v5 = vpack.c.bf16 %v474_v61, %v473_v60  ;;  %v1052_v7 = vpack.c.bf16 %v492_v63, %v491_v62 }
  0xd3   : > { %1019 = vmatpush3.bf16.msra.mxu0 %v1018_v35  ;;  %v391_v6 = vld [vmem:[%s1864_s9 + $0xf8] sm:$0xff]  ;;  %v475_v8 = vld [vmem:[%s1870_s10 + $0x40] sm:$0xff]  ;;  %v476_v9 = vld [vmem:[%s1870_s10 + $0x48] sm:$0xff]  ;;  %v1030_v12 = vpack.c.bf16 %v373_v3, %v372_v2 }
  0xd4   : > { %1021 = vmatprep.subr.bf16.mxu0 %v1020_v40  ;;  %v493_v10 = vld [vmem:[%s1870_s10 + $0xd0] sm:$0xff]  ;;  %v494_v11 = vld [vmem:[%s1870_s10 + $0xd8] sm:$0xff]  ;;  %v1032_v13 = vpack.c.bf16 %v391_v6, %v390_v4  ;;  %v1054_v16 = vpack.c.bf16 %v476_v9, %v475_v8  ;;  %v599_v20 = vld [vmem:[%s1872_s27 + $0x8] sm:$0xff] }
  0xd5   : > { %1047 = vmatpush3.bf16.msra.mxu1 %v1046_v57  ;;  %v374_v14 = vld [vmem:[%s1864_s9 + $0x70] sm:$0xff]  ;;  %v375_v15 = vld [vmem:[%s1864_s9 + $0x78] sm:$0xff]  ;;  %v1056_v18 = vpack.c.bf16 %v494_v11, %v493_v10  ;;  %v495_v22 = vld [vmem:[%s1870_s10 + $0xe0] sm:$0xff] }
  0xd6   : > { %1049 = vmatprep.subr.bf16.mxu1 %v1048_v59  ;;  %v477_v17 = vld [vmem:[%s1870_s10 + $0x50] sm:$0xff]  ;;  %v478_v19 = vld [vmem:[%s1870_s10 + $0x58] sm:$0xff]  ;;  %v496_v23 = vld [vmem:[%s1870_s10 + $0xe8] sm:$0xff]  ;;  %v1034_v24 = vpack.c.bf16 %v375_v15, %v374_v14 }
  0xd7   : > { %1023 = vmatpush3.bf16.msra.mxu0 %v1022_v50  ;;  %v601_v21 = vld [vmem:[%s1872_s27 + $0x18] sm:$0xff]  ;;  %v1058_v25 = vpack.c.bf16 %v478_v19, %v477_v17  ;;  %v1060_v27 = vpack.c.bf16 %v496_v23, %v495_v22  ;;  %v479_v28 = vld [vmem:[%s1870_s10 + $0x60] sm:$0xff]  ;;  %v480_v29 = vld [vmem:[%s1870_s10 + $0x68] sm:$0xff] }
  0xd8   : > { %1025 = vmatprep.subr.bf16.mxu0 %v1024_v53  ;;  %v1068_v26 = vpack.c.bf16 %v601_v21, %v599_v20  ;;  %v497_v30 = vld [vmem:[%s1870_s10 + $0xf0] sm:$0xff]  ;;  %v498_v31 = vld [vmem:[%s1870_s10 + $0xf8] sm:$0xff]  ;;  %v356_v32 = vld [vmem:[%s1856_s6] sm:$0xff]  ;;  %v1062_v34 = vpack.c.bf16 %v480_v29, %v479_v28  ;;  %v1508_v21 = vmov 0.0  }
  0xd9   : > { %1051 = vmatpush3.bf16.msra.mxu1 %v1050_v5  ;;  %v359_v33 = vld [vmem:[%s1856_s6 + $0x18] sm:$0xff]  ;;  %v1064_v35 = vpack.c.bf16 %v498_v31, %v497_v30  ;;  %v481_v36 = vld [vmem:[%s1870_s10 + $0x70] sm:$0xff]  ;;  %v598_v40 = vld [vmem:[%s1872_s27] sm:$0xff] }
  0xda   : > { %1053 = vmatprep.subr.bf16.mxu1 %v1052_v7  ;;  %v482_v37 = vld [vmem:[%s1870_s10 + $0x78] sm:$0xff]  ;;  %v358_v38 = vld [vmem:[%s1856_s6 + $0x10] sm:$0xff]  ;;  %v603_v43 = vld [vmem:[%s1872_s27 + $0x28] sm:$0xff] }
  0xdb   : > { %1027 = vmatpush3.bf16.msra.mxu0 %v1026_v0  ;;  %v1066_v39 = vpack.c.bf16 %v482_v37, %v481_v36  ;;  %v600_v41 = vld [vmem:[%s1872_s27 + $0x10] sm:$0xff]  ;;  %v605_v44 = vld [vmem:[%s1872_s27 + $0x38] sm:$0xff]  ;;  %v602_v46 = vld [vmem:[%s1872_s27 + $0x20] sm:$0xff] }
  0xdc   : > { %1029 = vmatprep.subr.bf16.mxu0 %v1028_v1  ;;  %v1070_v42 = vpack.c.bf16 %v600_v41, %v598_v40  ;;  %v1072_v45 = vpack.c.bf16 %v605_v44, %v603_v43  ;;  %v604_v47 = vld [vmem:[%s1872_s27 + $0x30] sm:$0xff]  ;;  %v607_v49 = vld [vmem:[%s1872_s27 + $0x48] sm:$0xff]  ;;  %v609_v50 = vld [vmem:[%s1872_s27 + $0x58] sm:$0xff] }
  0xdd   : > { %1055 = vmatpush3.bf16.msra.mxu1 %v1054_v16  ;;  %v1074_v48 = vpack.c.bf16 %v604_v47, %v602_v46  ;;  %v1076_v51 = vpack.c.bf16 %v609_v50, %v607_v49  ;;  %v606_v52 = vld [vmem:[%s1872_s27 + $0x40] sm:$0xff]  ;;  %v608_v53 = vld [vmem:[%s1872_s27 + $0x50] sm:$0xff]  ;;  %v611_v55 = vld [vmem:[%s1872_s27 + $0x68] sm:$0xff] }
  0xde   : > { %1057 = vmatprep.subr.bf16.mxu1 %v1056_v18  ;;  %v1078_v54 = vpack.c.bf16 %v608_v53, %v606_v52  ;;  %v613_v56 = vld [vmem:[%s1872_s27 + $0x78] sm:$0xff]  ;;  %v610_v58 = vld [vmem:[%s1872_s27 + $0x60] sm:$0xff]  ;;  %v612_v59 = vld [vmem:[%s1872_s27 + $0x70] sm:$0xff] }
  0xdf   : > { %1031 = vmatpush3.bf16.msra.mxu0 %v1030_v12  ;;  %v1080_v57 = vpack.c.bf16 %v613_v56, %v611_v55  ;;  %v1082_v60 = vpack.c.bf16 %v612_v59, %v610_v58  ;;  %v615_v61 = vld [vmem:[%s1872_s27 + $0x88] sm:$0xff]  ;;  %v617_v62 = vld [vmem:[%s1872_s27 + $0x98] sm:$0xff]  ;;  %v614_v63 = vld [vmem:[%s1872_s27 + $0x80] sm:$0xff] }
  0xe0   : > { %1033 = vmatprep.subr.bf16.mxu0 %v1032_v13  ;;  %v1084_v0 = vpack.c.bf16 %v617_v62, %v615_v61  ;;  %v616_v1 = vld [vmem:[%s1872_s27 + $0x90] sm:$0xff]  ;;  %v619_v2 = vld [vmem:[%s1872_s27 + $0xa8] sm:$0xff]  ;;  %v621_v3 = vld [vmem:[%s1872_s27 + $0xb8] sm:$0xff] }
  0xe1   : > { %1059 = vmatpush3.bf16.msra.mxu1 %v1058_v25  ;;  %v1086_v4 = vpack.c.bf16 %v616_v1, %v614_v63  ;;  %v1088_v5 = vpack.c.bf16 %v621_v3, %v619_v2  ;;  %v618_v6 = vld [vmem:[%s1872_s27 + $0xa0] sm:$0xff]  ;;  %v620_v7 = vld [vmem:[%s1872_s27 + $0xb0] sm:$0xff]  ;;  %v623_v8 = vld [vmem:[%s1872_s27 + $0xc8] sm:$0xff] }
  0xe2   : > { %1061 = vmatprep.subr.bf16.mxu1 %v1060_v27  ;;  %v625_v9 = vld [vmem:[%s1872_s27 + $0xd8] sm:$0xff]  ;;  %v1090_v10 = vpack.c.bf16 %v620_v7, %v618_v6  ;;  %v622_v12 = vld [vmem:[%s1872_s27 + $0xc0] sm:$0xff]  ;;  %v624_v13 = vld [vmem:[%s1872_s27 + $0xd0] sm:$0xff] }
  0xe3   : > { %1035 = vmatpush3.bf16.msra.mxu0 %v1034_v24  ;;  %v1092_v11 = vpack.c.bf16 %v625_v9, %v623_v8  ;;  %v1094_v14 = vpack.c.bf16 %v624_v13, %v622_v12  ;;  %v627_v15 = vld [vmem:[%s1872_s27 + $0xe8] sm:$0xff]  ;;  %v629_v16 = vld [vmem:[%s1872_s27 + $0xf8] sm:$0xff]  ;;  %v626_v18 = vld [vmem:[%s1872_s27 + $0xe0] sm:$0xff] }
  0xe4   : > { %1069 = vmatprep.subr.bf16.mxu0 %v1068_v26  ;;  %v1096_v17 = vpack.c.bf16 %v629_v16, %v627_v15  ;;  %v628_v19 = vld [vmem:[%s1872_s27 + $0xf0] sm:$0xff]  ;;  %v595_v55 = vld [vmem:[#allocation2 + $0x8] sm:$0xff]  ;;  %v597_v61 = vld [vmem:[#allocation2 + $0x18] sm:$0xff] }
  0xe5   : > { %1063 = vmatpush3.bf16.msra.mxu1 %v1062_v34  ;;  %v1098_v20 = vpack.c.bf16 %v628_v19, %v626_v18 }
  0xe6   : > { %457 = vmatmul.mubr.f32.vlgmr.msra.gmra.mrb[0].mxu0 %v356_v32  ;;  %1065 = vmatprep.subr.bf16.mxu1 %v1064_v35 }
  0xe7   : > { %461 = vmatprep.mubr.f32.mxu0 %v359_v33  ;;  %1071 = vmatpush1.bf16.msra.mxu0 %v1070_v42 }
  0xe8   : > { %1073 = vmatprep.subr.bf16.mxu0 %v1072_v45 }
  0xe9   : > { %1067 = vmatpush3.bf16.msra.mxu1 %v1066_v39 }
  0xea   : > { %462 = vmatmul.mubr.f32.gmra.mrb[2].mxu0 %v358_v38  ;;  %1100 = vmatprep.subr.bf16.mxu1 %v1068_v26 }
  0xeb   : > { %1075 = vmatpush1.bf16.msra.mxu0 %v1074_v48  ;;  %694 = vmatprep.mubr.f32.mxu0 %v1508_v21 }
  0xec   : > { %564 = vmatmul.mubr.f32.vlgmr.msra.gmra.mrb[0].mxu1 %v356_v32  ;;  %1077 = vmatprep.subr.bf16.mxu0 %v1076_v51 }
  0xed   : > { %568 = vmatprep.mubr.f32.mxu1 %v359_v33  ;;  %1108 = vmatpush1.bf16.msra.mxu1 %v1070_v42 }
  0xee   : > { %1101 = vmatprep.subr.bf16.mxu1 %v1072_v45 }
  0xef   : > { %1079 = vmatpush1.bf16.msra.mxu0 %v1078_v54 }
  0xf0   : > { %569 = vmatmul.mubr.f32.gmra.mrb[2].mxu1 %v358_v38  ;;  %1081 = vmatprep.subr.bf16.mxu0 %v1080_v57 }
  0xf1   : > { %1109 = vmatpush1.bf16.msra.mxu1 %v1074_v48  ;;  %700 = vmatprep.mubr.f32.mxu1 %v1508_v21 }
  0xf2   : > { %1102 = vmatprep.subr.bf16.mxu1 %v1076_v51 }
  0xf3   : > { %1083 = vmatpush1.bf16.msra.mxu0 %v1082_v60 }
  0xf4   : > { %1085 = vmatprep.subr.bf16.mxu0 %v1084_v0 }
  0xf5   : > { %1110 = vmatpush1.bf16.msra.mxu1 %v1078_v54  ;;  %v594_v54 = vld [vmem:[#allocation2] sm:$0xff] }
  0xf6   : > { %1103 = vmatprep.subr.bf16.mxu1 %v1080_v57 }
  0xf7   : > { %1087 = vmatpush1.bf16.msra.mxu0 %v1086_v4 }
  0xf8   : > { %1089 = vmatprep.subr.bf16.mxu0 %v1088_v5 }
  0xf9   : > { %1111 = vmatpush1.bf16.msra.mxu1 %v1082_v60  ;;  %v596_v60 = vld [vmem:[#allocation2 + $0x10] sm:$0xff] }
  0xfa   : > { %1104 = vmatprep.subr.bf16.mxu1 %v1084_v0 }
  0xfb   : > { %1091 = vmatpush1.bf16.msra.mxu0 %v1090_v10 }
  0xfc   : > { %1093 = vmatprep.subr.bf16.mxu0 %v1092_v11 }
  0xfd   : > { %1112 = vmatpush1.bf16.msra.mxu1 %v1086_v4 }
  0xfe   : > { %1105 = vmatprep.subr.bf16.mxu1 %v1088_v5 }
  0xff   : > { %1095 = vmatpush1.bf16.msra.mxu0 %v1094_v14 }
 0x100   : > { %1097 = vmatprep.subr.bf16.mxu0 %v1096_v17 }
 0x101   : > { %1113 = vmatpush1.bf16.msra.mxu1 %v1090_v10 }
 0x102   : > { %1106 = vmatprep.subr.bf16.mxu1 %v1092_v11 }
 0x103   : > { %1099 = vmatpush1.bf16.msra.mxu0 %v1098_v20 }
 0x105   : > { %1114 = vmatpush1.bf16.msra.mxu1 %v1094_v14 }
 0x106   : > { %1107 = vmatprep.subr.bf16.mxu1 %v1096_v17 }
 0x109   : > { %1115 = vmatpush1.bf16.msra.mxu1 %v1098_v20 }
 0x1b9   : > { %v960_v22 = vpop.f32.mrb[0].mxu0 }
 0x1ba   : > { %v961_v23 = vpop.f32.mrb[1].mxu0 }
 0x1bb   : > { %v962_v24 = vadd.f32 %v961_v23, %v960_v22 }
 0x1bd   : > { %v576_v25 = vmul.f32 0.044715, %v962_v24  ;;  %v963_v26 = vpop.f32.mrb[2].mxu0  ;;  %v574_v45 = vmul.f32 0.5, %v962_v24 }
 0x1be   : > { %v964_v27 = vpop.f32.mrb[3].mxu0 }
 0x1bf   : > { %v578_v28 = vmul.f32 %v962_v24, %v576_v25  ;;  %v965_v29 = vadd.f32 %v964_v27, %v963_v26  ;;  %v998_v32 = vpop.f32.mrb[0].mxu1 }
 0x1c0   : > { %v999_v34 = vpop.f32.mrb[1].mxu1 }
 0x1c1   : > { %v577_v30 = vmul.f32 0.044715, %v965_v29  ;;  %v580_v31 = vmul.f32 %v962_v24, %v578_v28  ;;  %v1000_v36 = vadd.f32 %v999_v34, %v998_v32  ;;  %v575_v50 = vmul.f32 0.5, %v965_v29 }
 0x1c3   : > { %v579_v33 = vmul.f32 %v965_v29, %v577_v30  ;;  %v582_v35 = vadd.f32 %v962_v24, %v580_v31  ;;  %v1001_v39 = vpop.f32.mrb[2].mxu1 }
 0x1c4   : > { %v1002_v40 = vpop.f32.mrb[3].mxu1 }
 0x1c5   : > { %v584_v37 = vmul.f32 0.7978846, %v582_v35  ;;  %v581_v38 = vmul.f32 %v965_v29, %v579_v33  ;;  %v1003_v42 = vadd.f32 %v1002_v40, %v1001_v39 }
 0x1c7   : > { %1242 = vtanh.f32 %v584_v37  ;;  %v583_v41 = vadd.f32 %v965_v29, %v581_v38 }
 0x1c9   : > { %v585_v43 = vmul.f32 0.7978846, %v583_v41 }
 0x1cb   : > { %1244 = vtanh.f32 %v585_v43 }
 0x1d1   : > { %v1243_v44 = vpop.eup %1242 }
 0x1d2   : > { %v588_v46 = vadd.f32 1.0, %v1243_v44 }
 0x1d4   : > { %v590_v47 = vmul.f32 %v588_v46, %v574_v45 }
 0x1d5   : > { %v1245_v48 = vpop.eup %1244 }
 0x1d6   : > { %v592_v49 = vmul.f32 %v1000_v36, %v590_v47  ;;  %v589_v51 = vadd.f32 1.0, %v1245_v48 }
 0x1d8   : > { %v591_v52 = vmul.f32 %v589_v51, %v575_v50  ;;  %695 = vmatmul.mubr.f32.vlgmr.msra.gmra.mrb[4].mxu0 %v592_v49 }
 0x1da   : > { %v593_v53 = vmul.f32 %v1003_v42, %v591_v52 }
 0x1dc   : > { %701 = vmatmul.mubr.f32.vlgmr.msra.gmra.mrb[4].mxu1 %v593_v53 }
 0x2ab   : > { %v696_v56 = vpop.f32.mrb[4].mxu0 }
 0x2ac   : > { %v707_v57 = vadd.f32 %v696_v56, %v594_v54  ;;  %v698_v58 = vpop.f32.mrb[5].mxu0 }
 0x2ad   : > { %v708_v59 = vadd.f32 %v698_v58, %v595_v55  ;;  %718 = sbr.rel (%p915_p8) target bundleno = 700 (0x2bc), region = 60 }
 0x2ae   : > { %711 = vst [vmem:[#allocation2] sm:$0xff] %v707_v57 }
 0x2af   : > { %712 = vst [vmem:[#allocation2 + $0x8] sm:$0xff] %v708_v59  ;;  %v702_v62 = vpop.f32.mrb[4].mxu1 }
 0x2b0   : > { %v709_v63 = vadd.f32 %v702_v62, %v596_v60  ;;  %v704_v0 = vpop.f32.mrb[5].mxu1 }
 0x2b1   : > { %v710_v1 = vadd.f32 %v704_v0, %v597_v61 }
 0x2b2   : > { %713 = vst [vmem:[#allocation2 + $0x10] sm:$0xff] %v709_v63 }
 0x2b3   : > { %714 = vst [vmem:[#allocation2 + $0x18] sm:$0xff] %v710_v1 }
 0x2b5   : > { %v719_v2 = vld [vmem:[#allocation2] sm:$0xff] }
 0x2b6   : > { %v720_v3 = vld [vmem:[#allocation2 + $0x8] sm:$0xff]  ;;  %723 = vst [vmem:[%s1878_s30] sm:$0xff] %v719_v2 }
 0x2b7   : > { %724 = vst [vmem:[%s1878_s30 + $0x8] sm:$0xff] %v720_v3 }
 0x2b9   : > { %v721_v4 = vld [vmem:[#allocation2 + $0x10] sm:$0xff] }
 0x2ba   : > { %725 = vst [vmem:[%s1878_s30 + $0x10] sm:$0xff] %v721_v4  ;;  %v722_v5 = vld [vmem:[#allocation2 + $0x18] sm:$0xff] }
 0x2bb   : > { %726 = vst [vmem:[%s1878_s30 + $0x18] sm:$0xff] %v722_v5 }
 0x2bc PF: > { %s2124_s7 = sld [smem:[#allocation19_spill]]  ;;  %s2125_s16 = sld [smem:[#allocation28_spill]] }
 0x2bd   : > { %s742_s24 = sshll.u32 %s1878_s30, 4  ;;  %s728_s14 = scalar_lea.sflag [#allocation5], %s1852_s12  ;;  %s1993_s24 = int_to_ptr.vmem [resolvable:$true] %s742_s24 }
 0x2be   : > { %s1366_s29 = scalar_lea.vmem %s1993_s24, 512  ;;  %p2127_p2 = scmp.ne.s32.totalorder %s2105_s5, 0 }
 0x2bf   : > { %p1367_p6 = scmp.ne.s32.totalorder %s1993_s24, %s1366_s29  ;;  %s1509_s8 = smov [#allocation11]  }
 0x2c0   : > { %s1370_s11 = sshll.u32 %s1509_s8, 4  ;;  %s1371_s11 = int_to_ptr.vmem [resolvable:$false] %s1370_s11 }
 0x2c1   : > { %p1368_p7 = pnand %p1367_p6, %p2127_p2  ;;  %s1372_s0 = scalar_lea.vmem %s1371_s11, 1024 }
 0x2c2   : > { %s927_s26 = sshll.u32 %s2124_s7, 9  ;;  %s2126_s6 = smov %s2125_s16 }
 0x2c3   : > { %s1990_s15 = scalar_lea.hbm %s2125_s16, %s927_s26  ;;  %p1369_p3 = pneg %p1368_p7 }
 0x2c4   : > { %p1373_p0 = scmp.lt.s32.totalorder %s1993_s24, %s1371_s11  ;;  %p1374_p13 = scmp.lt.s32.totalorder %s1372_s0, %s1366_s29 }
 0x2c6   : > { %p1375_p10 = por %p1374_p13, %p1373_p0 }
 0x2c8   : > { %p1376_p11 = pnand %p1375_p10, %p1369_p3 }
 0x2ca   : > { %1379 = shalt.err (!%p1376_p11)
}
 0x2cb   : > { %s1380_s20 = scalar_lea.hbm %s1990_s15, 512  ;;  %s1384_s28 = scalar_lea.hbm %s2126_s6, 1024 }
 0x2cc   : > { %p1381_p4 = scmp.ne.s32.totalorder %s1990_s15, %s1380_s20  ;;  %p1385_p12 = scmp.lt.u32.totalorder %s1990_s15, %s2126_s6 }
 0x2cd   : > { %p1386_p1 = scmp.lt.u32.totalorder %s1384_s28, %s1380_s20  ;;  %p1388_p6 = scmp.lt.u32.totalorder %s1380_s20, %s1990_s15 }
 0x2ce   : > { %p1382_p9 = pnand %p1381_p4, %p2127_p2 }
 0x2cf   : > { %p1387_p8 = por %p1386_p1, %p1385_p12 }
 0x2d0   : > { %p1383_p5 = pneg %p1382_p9 }
 0x2d1   : > { %p1389_p7 = por %p1388_p6, %p1387_p8 }
 0x2d3   : > { %p1390_p3 = pnand %p1389_p7, %p1383_p5 }
 0x2d5   : > { %1393 = shalt.err (!%p1390_p3)
}
 0x2d6   : > { %s1510_s21 = smov 256   ;;  %s1511_s1 = smov 16  }
 0x2d7   : > { %1124 = dma.vmem_to_hbm [thread:$0]  (%p2127_p2), %s1993_s24, 512, %s1990_s15, %s728_s14, %s1510_s21, %s1510_s21, %s1511_s1  }
 0x2d8 PF: > { %p1144_p0 = scmp.ge.s32.totalorder %s1496_s25, 2  ;;  %s757_s7 = sand.u32 1, %s1468_s18  }
 0x2d9   : > { %p2128_p13 = scmp.ne.s32.totalorder %s2107_s22, 0  ;;  %s758_s26 = scalar_lea.sflag [#allocation5], %s757_s7 }
 0x2db   : > { %p1140_p10 = pnand %p1144_p0, %p2128_p13 }
 0x2dd   : > { %1451 = dma.done.wait (!%p1140_p10), %s758_s26, 512  }
 0x2de   : > { %1453 = vsyncadd (!%p1140_p10), %s758_s26, 4294966784  ;;  %s26_s25 = sadd.s32 1, %s1496_s25   ;;  %s2129_s15 = sld [smem:[#allocation16_spill]] }
 0x2df   : > { %p23_p11 = scmp.ge.s32.totalorder %s26_s25, 10   ;;  %s2130_s4 = sld [smem:[#allocation22_spill]] }
 0x2e0   : > { %s2131_s5 = sld [smem:[#allocation17_spill]]  ;;  %s2132_s20 = sld [smem:[#allocation25_spill]] }
 0x2e1   : > { %s2133_s22 = sld [smem:[#allocation20_spill]]  ;;  %s2134_s12 = sld [smem:[#allocation21_spill]] }
 0x2e2   : > { %s2135_s24 = sld [smem:[#allocation23_spill]]  ;;  %s2136_s16 = smov %s1464_s17 }
 0x2e3   : > { %s2138_s18 = smov %s1472_s19  ;;  %s2140_s21 = smov %s1488_s23 }
 0x2e4   :  { %25 = sbr.rel (!%p23_p11) target bundleno = 17 (0x11), region = 126 }
 0x2e5   : > { %s2137_s17 = smov %s2130_s4 }
 0x2e6   : > { %s2139_s19 = smov %s2131_s5 }
 0x2e7   : > { %s2141_s23 = smov %s2134_s12 }
 0x2eb   :  { %763 = vsyncpa [#allocation4], 1 }
 0x2ec   :  { %765 = vsyncpa [#allocation4 + $0x1], 1 }
 0x2ed   :  { %766 = vsyncpa [#allocation7], 1 }
 0x2ee   :  { %768 = vsyncpa [#allocation7 + $0x1], 1 }
 0x2ef   :  { %769 = vsyncpa [#allocation10], 1 }
 0x2f0   :  { %771 = vsyncpa [#allocation10 + $0x1], 1 }
 0x2f1   :  { %772 = vsyncpa [#allocation5], 1 }
 0x2f2   :  { %774 = vsyncpa [#allocation5 + $0x1], 1 }

</bundles_post_ra>
